<compile_context>
chip_gen: v5e
topology: v5e:2x2
jax: 0.10.0
libtpu: 0.0.40
codegen_flags: <defaults>
</compile_context>

<pallas_src>
import functools

import jax
import jax.numpy as jnp
from jax.experimental import pallas as pl
from jax.experimental.pallas import tpu as pltpu


def critic_kernel(s_ref, a_ref, w1s_ref, w1a_ref, b1_ref,
                  w2_ref, b2_ref, w3_ref, b3_ref, q_ref):
    # fc1: two bf16 MXU matmuls (f32 accumulate) replace concat([s, a]) @ w1.
    s = s_ref[...].astype(jnp.bfloat16)
    a = a_ref[...].astype(jnp.bfloat16)
    h1 = (jnp.dot(s, w1s_ref[...], preferred_element_type=jnp.float32)
          + jnp.dot(a, w1a_ref[...], preferred_element_type=jnp.float32)
          + b1_ref[...])
    h1 = jnp.maximum(h1, 0.0)                       # f32 bias + ReLU (VPU)

    # fc2: bf16 MXU matmul, f32 bias + ReLU.
    h2 = jnp.dot(h1.astype(jnp.bfloat16), w2_ref[...],
                 preferred_element_type=jnp.float32) + b2_ref[...]
    h2 = jnp.maximum(h2, 0.0)

    # q_value: 1-wide projection as VPU multiply + lane reduction (skip MXU).
    q = jnp.sum(h2 * w3_ref[...], axis=-1, keepdims=True) + b3_ref[...]
    q_ref[...] = q.astype(q_ref.dtype)


def _round_up(x, m):
    return (x + m - 1) // m * m


def prepare_params(params, state_dim):
    """Convert nn.Linear-style ([in, out] pre-transposed) params to kernel layout."""
    w1, b1, w2, b2, w3, b3 = params
    return (
        w1[:state_dim].astype(jnp.bfloat16),    # [S, H]   fc1 weight, state slice
        w1[state_dim:].astype(jnp.bfloat16),    # [A, H]   fc1 weight, action slice
        b1.astype(jnp.float32),                 # [1, H]
        w2.astype(jnp.bfloat16),                # [H, H]
        b2.astype(jnp.float32),                 # [1, H]
        w3.reshape(1, -1).astype(jnp.float32),  # [1, H]   row layout for VPU reduce
        b3.astype(jnp.float32),                 # [1, 1]
    )


@functools.partial(jax.jit, static_argnames=("tile_b",))
def critic_forward(state, action, kparams, *, tile_b=256):
    """state: [B, S], action: [B, A]  ->  q_value: [B, 1] (float32)."""
    w1s, w1a, b1, w2, b2, w3, b3 = kparams
    B, S = state.shape
    A = action.shape[1]

    # Batch tile: 256 matches the v6e/v7x MXU; small batches run as a single
    # tile rounded up to the sublane multiple of 8.
    tb = tile_b if B >= tile_b else _round_up(B, 8)
    Bp = _round_up(B, tb)
    if Bp != B:
        pad = ((0, Bp - B), (0, 0))
        state = jnp.pad(state, pad)
        action = jnp.pad(action, pad)

    # Weights / biases use constant index_maps -> blocks stay resident in VMEM
    # across all batch tiles.
    def const(shape):
        return pl.BlockSpec(shape, lambda i: (0, 0))

    q = pl.pallas_call(
        critic_kernel,
        out_shape=jax.ShapeDtypeStruct((Bp, 1), jnp.float32),
        grid=(Bp // tb,),
        in_specs=[
            pl.BlockSpec((tb, S), lambda i: (i, 0)),   # state tile
            pl.BlockSpec((tb, A), lambda i: (i, 0)),   # action tile
            const(w1s.shape), const(w1a.shape), const(b1.shape),
            const(w2.shape), const(b2.shape),
            const(w3.shape), const(b3.shape),
        ],
        out_specs=pl.BlockSpec((tb, 1), lambda i: (i, 0)),
        compiler_params=pltpu.CompilerParams(
            dimension_semantics=("parallel",)),        # batch tiles split across TCs
    )(state, action, w1s, w1a, b1, w2, b2, w3, b3)
    return q[:B]


def init_params(key, state_dim, action_dim, hidden_size=256):
    """Deterministic synthetic parameters mirroring nn.Linear shapes.

    PyTorch stores Linear weights as [out, in]; we keep them pre-transposed
    ([in, out]) so the kernel computes x @ W directly. Biases are 2-D for
    clean TPU layout / broadcasting.
    """
    d_in = state_dim + action_dim
    k1, k2, k3, k4, k5, k6 = jax.random.split(key, 6)

    def uinit(k, shape, fan_in):
        bound = 1.0 / jnp.sqrt(float(fan_in))
        return jax.random.uniform(k, shape, jnp.float32, -bound, bound)

    w1 = uinit(k1, (d_in, hidden_size), d_in)
    b1 = uinit(k2, (1, hidden_size), d_in)
    w2 = uinit(k3, (hidden_size, hidden_size), hidden_size)
    b2 = uinit(k4, (1, hidden_size), hidden_size)
    w3 = uinit(k5, (hidden_size, 1), hidden_size)
    b3 = uinit(k6, (1, 1), hidden_size)
    return (w1, b1, w2, b2, w3, b3)


def critic_reference(state, action, kparams):
    """Pure-JAX reference mirroring the kernel's bf16-matmul numerics."""
    w1s, w1a, b1, w2, b2, w3, b3 = kparams
    s = state.astype(jnp.bfloat16)
    a = action.astype(jnp.bfloat16)
    h1 = jnp.maximum(
        jnp.dot(s, w1s, preferred_element_type=jnp.float32)
        + jnp.dot(a, w1a, preferred_element_type=jnp.float32) + b1, 0.0)
    h2 = jnp.maximum(
        jnp.dot(h1.astype(jnp.bfloat16), w2,
                preferred_element_type=jnp.float32) + b2, 0.0)
    return jnp.sum(h2 * w3, axis=-1, keepdims=True) + b3


if __name__ == "__main__":
    # Small shapes consistent with the module: batch=8, state_dim=16, action_dim=4.
    batch, state_dim, action_dim, hidden = 8, 16, 4, 256

    key = jax.random.PRNGKey(0)
    kp, ks, ka = jax.random.split(key, 3)
    params = init_params(kp, state_dim, action_dim, hidden)
    kparams = prepare_params(params, state_dim)
    state = jax.random.normal(ks, (batch, state_dim), jnp.float32)
    action = jax.random.normal(ka, (batch, action_dim), jnp.float32)

    q = jax.block_until_ready(critic_forward(state, action, kparams))

    q_ref = critic_reference(state, action, kparams)
    assert q.shape == (batch, 1)
    assert jnp.allclose(q, q_ref, atol=5e-3, rtol=5e-3), "mismatch vs reference"

    print("KERNEL_OK")
</pallas_src>

<mosaic_0001>
module attributes {stable_mosaic.version = 11 : i64} {
  func.func @critic_kernel(%arg0: i32, %arg1: memref<8x16xf32, #tpu.memory_space<vmem>>, %arg2: memref<8x4xf32, #tpu.memory_space<vmem>>, %arg3: memref<16x256xbf16, #tpu.memory_space<vmem>>, %arg4: memref<4x256xbf16, #tpu.memory_space<vmem>>, %arg5: memref<1x256xf32, #tpu.memory_space<vmem>>, %arg6: memref<256x256xbf16, #tpu.memory_space<vmem>>, %arg7: memref<1x256xf32, #tpu.memory_space<vmem>>, %arg8: memref<1x256xf32, #tpu.memory_space<vmem>>, %arg9: memref<1x1xf32, #tpu.memory_space<vmem>>, %arg10: memref<8x1xf32, #tpu.memory_space<vmem>>) attributes {dimension_semantics = [#tpu.dimension_semantics<parallel>], iteration_bounds = array<i64: 1>, scalar_prefetch = 0 : i64, scratch_operands = 0 : i64, tpu.core_type = #tpu.core_type<tc>, window_params = [{transform_indices = @transform_0, window_bounds = array<i64: 8, 16>}, {transform_indices = @transform_1, window_bounds = array<i64: 8, 4>}, {pipeline_mode = #tpu.pipeline_mode<synchronous>, transform_indices = @transform_2, window_bounds = array<i64: 16, 256>}, {pipeline_mode = #tpu.pipeline_mode<synchronous>, transform_indices = @transform_3, window_bounds = array<i64: 4, 256>}, {pipeline_mode = #tpu.pipeline_mode<synchronous>, transform_indices = @transform_4, window_bounds = array<i64: 1, 256>}, {pipeline_mode = #tpu.pipeline_mode<synchronous>, transform_indices = @transform_5, window_bounds = array<i64: 256, 256>}, {pipeline_mode = #tpu.pipeline_mode<synchronous>, transform_indices = @transform_6, window_bounds = array<i64: 1, 256>}, {pipeline_mode = #tpu.pipeline_mode<synchronous>, transform_indices = @transform_7, window_bounds = array<i64: 1, 256>}, {pipeline_mode = #tpu.pipeline_mode<synchronous>, transform_indices = @transform_8, window_bounds = array<i64: 1, 1>}, {transform_indices = @transform_9, window_bounds = array<i64: 8, 1>}]} {
    %c0 = arith.constant 0 : index
    %c0_0 = arith.constant 0 : index
    %0 = vector.load %arg1[%c0, %c0_0] : memref<8x16xf32, #tpu.memory_space<vmem>>, vector<8x16xf32>
    %1 = arith.truncf %0 : vector<8x16xf32> to vector<8x16xbf16>
    %c0_1 = arith.constant 0 : index
    %c0_2 = arith.constant 0 : index
    %2 = vector.load %arg2[%c0_1, %c0_2] : memref<8x4xf32, #tpu.memory_space<vmem>>, vector<8x4xf32>
    %3 = arith.truncf %2 : vector<8x4xf32> to vector<8x4xbf16>
    %c0_3 = arith.constant 0 : index
    %c0_4 = arith.constant 0 : index
    %4 = vector.load %arg3[%c0_3, %c0_4] : memref<16x256xbf16, #tpu.memory_space<vmem>>, vector<16x256xbf16>
    %cst = arith.constant dense<0.000000e+00> : vector<8x256xf32>
    %5 = tpu.matmul %1, %4, %cst {dimension_numbers = #tpu.dot_dimension_numbers<[1], [0], [0], [1], [0, 0, 1, 1], [], []>} : vector<8x16xbf16>, vector<16x256xbf16>, vector<8x256xf32> -> vector<8x256xf32>
    %c0_5 = arith.constant 0 : index
    %c0_6 = arith.constant 0 : index
    %6 = vector.load %arg4[%c0_5, %c0_6] : memref<4x256xbf16, #tpu.memory_space<vmem>>, vector<4x256xbf16>
    %cst_7 = arith.constant dense<0.000000e+00> : vector<8x256xf32>
    %7 = tpu.matmul %3, %6, %cst_7 {dimension_numbers = #tpu.dot_dimension_numbers<[1], [0], [0], [1], [0, 0, 1, 1], [], []>} : vector<8x4xbf16>, vector<4x256xbf16>, vector<8x256xf32> -> vector<8x256xf32>
    %8 = arith.addf %5, %7 : vector<8x256xf32>
    %c0_8 = arith.constant 0 : index
    %c0_9 = arith.constant 0 : index
    %9 = vector.load %arg5[%c0_8, %c0_9] : memref<1x256xf32, #tpu.memory_space<vmem>>, vector<1x256xf32>
    %10 = vector.broadcast %9 : vector<1x256xf32> to vector<8x256xf32>
    %11 = arith.addf %8, %10 : vector<8x256xf32>
    %cst_10 = arith.constant 0.000000e+00 : f32
    %12 = vector.broadcast %cst_10 : f32 to vector<8x256xf32>
    %13 = arith.maximumf %11, %12 : vector<8x256xf32>
    %14 = arith.truncf %13 : vector<8x256xf32> to vector<8x256xbf16>
    %c0_11 = arith.constant 0 : index
    %c0_12 = arith.constant 0 : index
    %15 = vector.load %arg6[%c0_11, %c0_12] : memref<256x256xbf16, #tpu.memory_space<vmem>>, vector<256x256xbf16>
    %cst_13 = arith.constant dense<0.000000e+00> : vector<8x256xf32>
    %16 = tpu.matmul %14, %15, %cst_13 {dimension_numbers = #tpu.dot_dimension_numbers<[1], [0], [0], [1], [0, 0, 1, 1], [], []>} : vector<8x256xbf16>, vector<256x256xbf16>, vector<8x256xf32> -> vector<8x256xf32>
    %c0_14 = arith.constant 0 : index
    %c0_15 = arith.constant 0 : index
    %17 = vector.load %arg7[%c0_14, %c0_15] : memref<1x256xf32, #tpu.memory_space<vmem>>, vector<1x256xf32>
    %18 = vector.broadcast %17 : vector<1x256xf32> to vector<8x256xf32>
    %19 = arith.addf %16, %18 : vector<8x256xf32>
    %cst_16 = arith.constant 0.000000e+00 : f32
    %20 = vector.broadcast %cst_16 : f32 to vector<8x256xf32>
    %21 = arith.maximumf %19, %20 : vector<8x256xf32>
    %c0_17 = arith.constant 0 : index
    %c0_18 = arith.constant 0 : index
    %22 = vector.load %arg8[%c0_17, %c0_18] : memref<1x256xf32, #tpu.memory_space<vmem>>, vector<1x256xf32>
    %23 = vector.broadcast %22 : vector<1x256xf32> to vector<8x256xf32>
    %24 = arith.mulf %21, %23 : vector<8x256xf32>
    %cst_19 = arith.constant dense<0.000000e+00> : vector<8xf32>
    %25 = vector.multi_reduction <add>, %24, %cst_19 [1] : vector<8x256xf32> to vector<8xf32>
    %26 = vector.shape_cast %25 : vector<8xf32> to vector<8x1xf32>
    %c0_20 = arith.constant 0 : index
    %c0_21 = arith.constant 0 : index
    %27 = vector.load %arg9[%c0_20, %c0_21] : memref<1x1xf32, #tpu.memory_space<vmem>>, vector<1x1xf32>
    %28 = vector.broadcast %27 : vector<1x1xf32> to vector<8x1xf32>
    %29 = arith.addf %26, %28 : vector<8x1xf32>
    %c0_22 = arith.constant 0 : index
    %c0_23 = arith.constant 0 : index
    %30 = vector.load %arg10[%c0_22, %c0_23] : memref<8x1xf32, #tpu.memory_space<vmem>>, vector<8x1xf32>
    tpu.vector_store %arg10[%c0_22, %c0_23], %29 {strides = array<i32>} : memref<8x1xf32, #tpu.memory_space<vmem>>, vector<8x1xf32>,
    return
  }
  func.func @transform_0(%arg0: i32) -> (i32, i32) {
    %c0_i32 = arith.constant 0 : i32
    %c0_i32_0 = arith.constant 0 : i32
    return %arg0, %c0_i32 : i32, i32
  }
  func.func @transform_1(%arg0: i32) -> (i32, i32) {
    %c0_i32 = arith.constant 0 : i32
    %c0_i32_0 = arith.constant 0 : i32
    return %arg0, %c0_i32 : i32, i32
  }
  func.func @transform_2(%arg0: i32) -> (i32, i32) {
    %c0_i32 = arith.constant 0 : i32
    %c0_i32_0 = arith.constant 0 : i32
    %c0_i32_1 = arith.constant 0 : i32
    return %c0_i32, %c0_i32_0 : i32, i32
  }
  func.func @transform_3(%arg0: i32) -> (i32, i32) {
    %c0_i32 = arith.constant 0 : i32
    %c0_i32_0 = arith.constant 0 : i32
    %c0_i32_1 = arith.constant 0 : i32
    return %c0_i32, %c0_i32_0 : i32, i32
  }
  func.func @transform_4(%arg0: i32) -> (i32, i32) {
    %c0_i32 = arith.constant 0 : i32
    %c0_i32_0 = arith.constant 0 : i32
    %c0_i32_1 = arith.constant 0 : i32
    return %c0_i32, %c0_i32_0 : i32, i32
  }
  func.func @transform_5(%arg0: i32) -> (i32, i32) {
    %c0_i32 = arith.constant 0 : i32
    %c0_i32_0 = arith.constant 0 : i32
    %c0_i32_1 = arith.constant 0 : i32
    return %c0_i32, %c0_i32_0 : i32, i32
  }
  func.func @transform_6(%arg0: i32) -> (i32, i32) {
    %c0_i32 = arith.constant 0 : i32
    %c0_i32_0 = arith.constant 0 : i32
    %c0_i32_1 = arith.constant 0 : i32
    return %c0_i32, %c0_i32_0 : i32, i32
  }
  func.func @transform_7(%arg0: i32) -> (i32, i32) {
    %c0_i32 = arith.constant 0 : i32
    %c0_i32_0 = arith.constant 0 : i32
    %c0_i32_1 = arith.constant 0 : i32
    return %c0_i32, %c0_i32_0 : i32, i32
  }
  func.func @transform_8(%arg0: i32) -> (i32, i32) {
    %c0_i32 = arith.constant 0 : i32
    %c0_i32_0 = arith.constant 0 : i32
    %c0_i32_1 = arith.constant 0 : i32
    return %c0_i32, %c0_i32_0 : i32, i32
  }
  func.func @transform_9(%arg0: i32) -> (i32, i32) {
    %c0_i32 = arith.constant 0 : i32
    %c0_i32_0 = arith.constant 0 : i32
    return %arg0, %c0_i32 : i32, i32
  }
}

</mosaic_0001>

<bundles_post_ra>
// kernel: critic_forward.1
= control target key start
LH: loop header
LB: loop body
LE: loop exit
PB: predicated region body
PF: predicated region fallthrough
CT: control target
= control target key end

     0   :  { %s762_s0 = inlined_call_operand.vmem [shape: f32[8,16], index: 0, kind: input, shape index: {}]   ;;  %s763_s1 = inlined_call_operand.vmem [shape: f32[8,4], index: 1, kind: input, shape index: {}]   ;;  %s764_s2 = inlined_call_operand.hbm [shape: bf16[16,256], index: 2, kind: input, shape index: {}]   ;;  %s765_s3 = inlined_call_operand.vmem [shape: bf16[4,256], index: 3, kind: input, shape index: {}]   ;;  %s766_s4 = inlined_call_operand.vmem [shape: f32[1,256], index: 4, kind: input, shape index: {}]   ;;  %s767_s5 = inlined_call_operand.hbm [shape: bf16[256,256], index: 5, kind: input, shape index: {}]   ;;  %s768_s6 = inlined_call_operand.vmem [shape: f32[1,256], index: 6, kind: input, shape index: {}]   ;;  %s769_s7 = inlined_call_operand.vmem [shape: f32[1,256], index: 7, kind: input, shape index: {}]   ;;  %s770_s8 = inlined_call_operand.<no memory space> [shape: f32[1,1], index: 8, kind: input, shape index: {}]   ;;  %s771_s9 = inlined_call_operand.vmem [shape: f32[8,1], index: 9, kind: output, shape index: {}]  }
   0x1   :  { %v14_v0 = vstv %s770_s8 }
   0x2   :  { %15 = vst [vmem:[#allocation2] sm:$0x1] %v14_v0 }
   0x3   :  { %16 = vsyncpa [#allocation4], 0  ;;  %s26_s13 = sshll.u32 %s764_s2, 4  ;;  %s27_s13 = int_to_ptr.hbm [resolvable:$true] %s26_s13 }
   0x4   :  { %17 = vsyncpa [#allocation6], 0  ;;  %s672_s14 = smov [#allocation3]   ;;  %s43_s18 = sshll.u32 %s767_s5, 4  ;;  %s44_s18 = int_to_ptr.hbm [resolvable:$true] %s43_s18 }
   0x5   :  { %s28_s15 = sshll.u32 %s672_s14, 4  ;;  %s673_s19 = smov 128   ;;  %s29_s15 = int_to_ptr.vmem [resolvable:$true] %s28_s15 }
   0x6   :  { %s674_s20 = smov 8   ;;  %s675_s8 = smov [#allocation5]  }
   0x7   :  { %34 = dma.hbm_to_vmem [thread:$0]  %s27_s13, 256, %s29_s15, [#allocation4], %s673_s19, %s673_s19, %s674_s20  }
   0x8   :  { %s45_s21 = sshll.u32 %s675_s8, 4  ;;  %s46_s21 = int_to_ptr.vmem [resolvable:$true] %s45_s21 }
   0x9   :  { %51 = dma.hbm_to_vmem [thread:$0]  %s44_s18, 4096, %s46_s21, [#allocation6], %s673_s19, %s673_s19, %s674_s20  }
   0xa   :  { %668 = dma.done.wait [#allocation4], 256  }
   0xb   :  { %669 = vsyncadd [#allocation4], 4294967040 }
   0xc   :  { %670 = dma.done.wait [#allocation6], 4096  }
   0xd   :  { %671 = vsyncadd [#allocation6], 4294963200  ;;  %v445_v1 = vld [vmem:[#allocation3] sm:$0xf]  ;;  %v582_v2 = vld [vmem:[#allocation3 + $0x4] sm:$0xf0] }
   0xe   :  { %v581_v3 = vld [vmem:[#allocation3 + $0x4] sm:$0xf]  ;;  %v446_v4 = vor.u32 %v582_v2, %v445_v1  ;;  %v447_v5 = vld [vmem:[#allocation3 + $0x8] sm:$0xf0]  ;;  %v67_v6 = vld [vmem:[%s762_s0] sm:$0xff]  ;;  %vm123_vm0 = vcmask 130048  }
   0xf   :  { %v73_v7 = vld [vmem:[%s765_s3] sm:$0xf]  ;;  %v450_v8 = vor.u32 %v581_v3, %v447_v5  ;;  %v68_v9 = vpack.c.bf16 %v67_v6, %v67_v6  ;;  %v511_v10 = vld [vmem:[#allocation5 + $0x70] sm:$0xf]  ;;  %v598_v11 = vld [vmem:[#allocation5 + $0x74] sm:$0xf0] }
  0x10   :  { %75 = vst [vmem:[#allocation1] ss:$4 sm:$0xff] %v73_v7  ;;  %134 = vmatpush.bf16.msra.mxu2 %v446_v4  ;;  %v597_v12 = vld [vmem:[#allocation5 + $0x74] sm:$0xf]  ;;  %v513_v13 = vld [vmem:[#allocation5 + $0x78] sm:$0xf0]  ;;  %v512_v26 = vor.u32 %v598_v11, %v511_v10 }
  0x11   :  { %147 = vmatpush.bf16.msra.mxu3 %v450_v8  ;;  %v613_v14 = vld [vmem:[#allocation5 + $0xf4] sm:$0xf]  ;;  %v575_v15 = vld [vmem:[#allocation5 + $0xf0] sm:$0xf]  ;;  %v614_v16 = vld [vmem:[#allocation5 + $0xf4] sm:$0xf0]  ;;  %v516_v17 = vor.u32 %v597_v12, %v513_v13 }
  0x12   :  { %v577_v18 = vld [vmem:[#allocation5 + $0xf8] sm:$0xf0]  ;;  %vm82_vm1 = vcmask 1041408   ;;  %v69_v19 = vld [vmem:[%s763_s1] sm:$0xff]  ;;  %v503_v22 = vld [vmem:[#allocation5 + $0x60] sm:$0xf]  ;;  %v576_v27 = vor.u32 %v614_v16, %v575_v15 }
  0x13   :  { %451 = vmatmul.msk.bf16.vlgmr.msra.gmra.mxu2 %vm123_vm0, %v68_v9  ;;  %v580_v20 = vor.u32 %v613_v14, %v577_v18  ;;  %v595_v21 = vld [vmem:[#allocation5 + $0x64] sm:$0xf]  ;;  %v505_v23 = vld [vmem:[#allocation5 + $0x68] sm:$0xf0]  ;;  %v596_v28 = vld [vmem:[#allocation5 + $0x64] sm:$0xf0]  ;;  %v70_v37 = vpack.c.bf16 %v69_v19, %v69_v19 }
  0x14   :  { %452 = vmatmul.msk.bf16.vlgmr.msra.gmra.mxu3 %vm123_vm0, %v68_v9  ;;  %389 = vmatpush.bf16.msrb.mxu2 %v516_v17  ;;  %v611_v24 = vld [vmem:[#allocation5 + $0xe4] sm:$0xf]  ;;  %v569_v25 = vld [vmem:[#allocation5 + $0xe8] sm:$0xf0]  ;;  %v567_v29 = vld [vmem:[#allocation5 + $0xe0] sm:$0xf]  ;;  %v508_v33 = vor.u32 %v595_v21, %v505_v23  ;;  %v504_v42 = vor.u32 %v596_v28, %v503_v22 }
  0x15   :  { %402 = vmatpush.bf16.msrb.mxu3 %v580_v20  ;;  %v612_v30 = vld [vmem:[#allocation5 + $0xe4] sm:$0xf0]  ;;  %v572_v34 = vor.u32 %v611_v24, %v569_v25  ;;  %vm78_vm2 = vcmask 31744   ;;  %v593_v38 = vld [vmem:[#allocation5 + $0x54] sm:$0xf]  ;;  %vm433_vm3 = vcmask 7168  }
  0x16   :  { %v497_v39 = vld [vmem:[#allocation5 + $0x58] sm:$0xf0]  ;;  %v609_v40 = vld [vmem:[#allocation5 + $0xd4] sm:$0xf]  ;;  %v568_v43 = vor.u32 %v612_v30, %v567_v29  ;;  %v495_v44 = vld [vmem:[#allocation5 + $0x50] sm:$0xf] }
  0x17   :  { %v76_v31 = vld.sshfl [vmem:[#allocation1] sm:$0xff pattern:$0x73625140]  ;;  %v77_v32 = vld.sshfl [vmem:[#allocation1 + $0x8] sm:$0xff pattern:$0x73625140]  ;;  %v500_v48 = vor.u32 %v593_v38, %v497_v39 }
  0x18   :  { %v83_v35 = vsel %vm82_vm1, %v76_v31, 0  ;;  %v85_v36 = vsel %vm82_vm1, %v77_v32, 0  ;;  %v561_v41 = vld [vmem:[#allocation5 + $0xd8] sm:$0xf0]  ;;  %v594_v45 = vld [vmem:[#allocation5 + $0x54] sm:$0xf0]  ;;  %390 = vmatpush.bf16.msrb.mxu2 %v508_v33 }
  0x19   :  { %94 = vmatpush.bf16.msra.mxu0 %v83_v35  ;;  %107 = vmatpush.bf16.msra.mxu1 %v85_v36  ;;  %v559_v46 = vld [vmem:[#allocation5 + $0xd0] sm:$0xf]  ;;  %v610_v47 = vld [vmem:[#allocation5 + $0xd4] sm:$0xf0]  ;;  %v564_v49 = vor.u32 %v609_v40, %v561_v41  ;;  %v591_v50 = vld [vmem:[#allocation5 + $0x44] sm:$0xf]  ;;  %v496_v54 = vor.u32 %v594_v45, %v495_v44 }
  0x1a   :  { %403 = vmatpush.bf16.msrb.mxu3 %v572_v34  ;;  %v489_v51 = vld [vmem:[#allocation5 + $0x48] sm:$0xf0]  ;;  %v607_v52 = vld [vmem:[#allocation5 + $0xc4] sm:$0xf]  ;;  %v560_v55 = vor.u32 %v610_v47, %v559_v46  ;;  %v487_v56 = vld [vmem:[#allocation5 + $0x40] sm:$0xf] }
  0x1b   :  { %v553_v53 = vld [vmem:[#allocation5 + $0xc8] sm:$0xf0]  ;;  %v592_v57 = vld [vmem:[#allocation5 + $0x44] sm:$0xf0]  ;;  %v551_v58 = vld [vmem:[#allocation5 + $0xc0] sm:$0xf]  ;;  %v492_v60 = vor.u32 %v591_v50, %v489_v51 }
  0x1c   :  { %441 = vmatmul.msk.bf16.vlgmr.msra.gmra.mxu0 %vm78_vm2, %v70_v37  ;;  %442 = vmatmul.msk.bf16.vlgmr.msra.gmra.mxu1 %vm78_vm2, %v70_v37  ;;  %v608_v59 = vld [vmem:[#allocation5 + $0xc4] sm:$0xf0]  ;;  %v556_v61 = vor.u32 %v607_v52, %v553_v53  ;;  %v589_v62 = vld [vmem:[#allocation5 + $0x34] sm:$0xf]  ;;  %v481_v63 = vld [vmem:[#allocation5 + $0x38] sm:$0xf0]  ;;  %v488_v2 = vor.u32 %v592_v57, %v487_v56 }
  0x1d   :  { %363 = vmatpush.bf16.msrb.mxu0 %v512_v26  ;;  %376 = vmatpush.bf16.msrb.mxu1 %v576_v27  ;;  %v605_v0 = vld [vmem:[#allocation5 + $0xb4] sm:$0xf]  ;;  %v545_v1 = vld [vmem:[#allocation5 + $0xb8] sm:$0xf0]  ;;  %v552_v3 = vor.u32 %v608_v59, %v551_v58  ;;  %v479_v4 = vld [vmem:[#allocation5 + $0x30] sm:$0xf]  ;;  %v484_v8 = vor.u32 %v589_v62, %v481_v63 }
  0x1e   :  { %391 = vmatpush.bf16.msrb.mxu2 %v500_v48  ;;  %404 = vmatpush.bf16.msrb.mxu3 %v564_v49  ;;  %v590_v5 = vld [vmem:[#allocation5 + $0x34] sm:$0xf0]  ;;  %v543_v6 = vld [vmem:[#allocation5 + $0xb0] sm:$0xf]  ;;  %v548_v9 = vor.u32 %v605_v0, %v545_v1  ;;  %v587_v10 = vld [vmem:[#allocation5 + $0x24] sm:$0xf] }
  0x1f   :  { %v606_v7 = vld [vmem:[#allocation5 + $0xb4] sm:$0xf0]  ;;  %v473_v11 = vld [vmem:[#allocation5 + $0x28] sm:$0xf0]  ;;  %v603_v12 = vld [vmem:[#allocation5 + $0xa4] sm:$0xf]  ;;  %v480_v14 = vor.u32 %v590_v5, %v479_v4 }
  0x20   :  { %v537_v13 = vld [vmem:[#allocation5 + $0xa8] sm:$0xf0]  ;;  %v544_v15 = vor.u32 %v606_v7, %v543_v6  ;;  %v471_v16 = vld [vmem:[#allocation5 + $0x20] sm:$0xf]  ;;  %v588_v17 = vld [vmem:[#allocation5 + $0x24] sm:$0xf0]  ;;  %v476_v20 = vor.u32 %v587_v10, %v473_v11 }
  0x21   :  { %364 = vmatpush.bf16.msrb.mxu0 %v504_v42  ;;  %377 = vmatpush.bf16.msrb.mxu1 %v568_v43  ;;  %v535_v18 = vld [vmem:[#allocation5 + $0xa0] sm:$0xf]  ;;  %v604_v19 = vld [vmem:[#allocation5 + $0xa4] sm:$0xf0]  ;;  %v540_v21 = vor.u32 %v603_v12, %v537_v13  ;;  %v472_v22 = vor.u32 %v588_v17, %v471_v16  ;;  %v463_v24 = vld [vmem:[#allocation5 + $0x10] sm:$0xf] }
  0x22   :  { %392 = vmatpush.bf16.msrb.mxu2 %v492_v60  ;;  %405 = vmatpush.bf16.msrb.mxu3 %v556_v61  ;;  %v536_v23 = vor.u32 %v604_v19, %v535_v18  ;;  %v586_v25 = vld [vmem:[#allocation5 + $0x14] sm:$0xf0]  ;;  %v527_v26 = vld [vmem:[#allocation5 + $0x90] sm:$0xf]  ;;  %v585_v29 = vld [vmem:[#allocation5 + $0x14] sm:$0xf] }
  0x23   :  { %v464_v27 = vor.u32 %v586_v25, %v463_v24  ;;  %v602_v28 = vld [vmem:[#allocation5 + $0x94] sm:$0xf0]  ;;  %v465_v31 = vld [vmem:[#allocation5 + $0x18] sm:$0xf0]  ;;  %v601_v32 = vld [vmem:[#allocation5 + $0x94] sm:$0xf] }
  0x24   :  { %v528_v30 = vor.u32 %v602_v28, %v527_v26  ;;  %v468_v33 = vor.u32 %v585_v29, %v465_v31  ;;  %v529_v34 = vld [vmem:[#allocation5 + $0x98] sm:$0xf0]  ;;  %v455_v36 = vld [vmem:[#allocation5] sm:$0xf]  ;;  %v584_v37 = vld [vmem:[#allocation5 + $0x4] sm:$0xf0] }
  0x25   :  { %365 = vmatpush.bf16.msrb.mxu0 %v496_v54  ;;  %378 = vmatpush.bf16.msrb.mxu1 %v560_v55  ;;  %v532_v35 = vor.u32 %v601_v32, %v529_v34  ;;  %v519_v38 = vld [vmem:[#allocation5 + $0x80] sm:$0xf]  ;;  %v456_v39 = vor.u32 %v584_v37, %v455_v36  ;;  %v600_v40 = vld [vmem:[#allocation5 + $0x84] sm:$0xf0]  ;;  %v583_v41 = vld [vmem:[#allocation5 + $0x4] sm:$0xf] }
  0x26   :  { %393 = vmatpush.bf16.msrb.mxu2 %v484_v8  ;;  %406 = vmatpush.bf16.msrb.mxu3 %v548_v9  ;;  %v457_v42 = vld [vmem:[#allocation5 + $0x8] sm:$0xf0]  ;;  %v520_v43 = vor.u32 %v600_v40, %v519_v38  ;;  %v599_v45 = vld [vmem:[#allocation5 + $0x84] sm:$0xf] }
  0x27   :  { %v460_v44 = vor.u32 %v583_v41, %v457_v42  ;;  %v521_v46 = vld [vmem:[#allocation5 + $0x88] sm:$0xf0]  ;;  %v153_v48 = vld [vmem:[%s766_s4] sm:$0x3] }
  0x28   :  { %v524_v47 = vor.u32 %v599_v45, %v521_v46  ;;  %v155_v51 = vperm.slane %v153_v48, 0  ;;  %v156_v52 = vperm.slane %v153_v48, 1  ;;  %v417_v12 = vld [vmem:[%s769_s7] sm:$0x3]  ;;  %v619_v26 = vld [vmem:[#allocation2] ss:$0 sm:$0xff] }
  0x29   :  { %366 = vmatpush.bf16.msrb.mxu0 %v488_v2  ;;  %379 = vmatpush.bf16.msrb.mxu1 %v552_v3  ;;  %v197_v3 = vld [vmem:[%s768_s6] sm:$0x3]  ;;  %v419_v18 = vperm.slane %v417_v12, 0  ;;  %v420_v19 = vperm.slane %v417_v12, 1 }
  0x2a   :  { %394 = vmatpush.bf16.msrb.mxu2 %v476_v20  ;;  %407 = vmatpush.bf16.msrb.mxu3 %v540_v21  ;;  %v199_v4 = vperm.slane %v197_v3, 0  ;;  %v200_v8 = vperm.slane %v197_v3, 1 }
  0x2d   :  { %367 = vmatpush.bf16.msrb.mxu0 %v480_v14  ;;  %380 = vmatpush.bf16.msrb.mxu1 %v544_v15 }
  0x2e   :  { %395 = vmatpush.bf16.msrb.mxu2 %v468_v33  ;;  %408 = vmatpush.bf16.msrb.mxu3 %v532_v35 }
  0x31   :  { %368 = vmatpush.bf16.msrb.mxu0 %v472_v22  ;;  %381 = vmatpush.bf16.msrb.mxu1 %v536_v23 }
  0x32   :  { %396 = vmatpush.bf16.msrb.mxu2 %v460_v44  ;;  %409 = vmatpush.bf16.msrb.mxu3 %v524_v47 }
  0x35   :  { %369 = vmatpush.bf16.msrb.mxu0 %v464_v27  ;;  %382 = vmatpush.bf16.msrb.mxu1 %v528_v30 }
  0x39   :  { %370 = vmatpush.bf16.msrb.mxu0 %v456_v39  ;;  %383 = vmatpush.bf16.msrb.mxu1 %v520_v43 }
  0x96   :  { %v136_v49 = vpop.f32.mrf.mxu2 }
  0x97   :  { %v149_v50 = vpop.f32.mrf.mxu3 }
  0x99   :  { %v96_v53 = vpop.f32.mrf.mxu0  ;;  %v109_v54 = vpop.f32.mrf.mxu1 }
  0x9a   :  { %v137_v55 = vadd.f32 %v136_v49, %v96_v53  ;;  %v150_v56 = vadd.f32 %v149_v50, %v109_v54 }
  0x9c   :  { %v159_v57 = vadd.f32 %v155_v51, %v137_v55  ;;  %v160_v58 = vadd.f32 %v156_v52, %v150_v56 }
  0x9e   :  { %v161_v59 = vmax.f32 %v159_v57, 0.0  ;;  %v162_v60 = vmax.f32 %v160_v58, 0.0  ;;  %v138_v61 = vpop.f32.mrf.mxu2 }
  0x9f   :  { %v151_v0 = vpop.f32.mrf.mxu3 }
  0xa0   :  { %v163_v62 = vpack.c.bf16 %v161_v59, %v161_v59  ;;  %v164_v63 = vpack.c.bf16 %v162_v60, %v162_v60 }
  0xa1   :  { %v98_v1 = vpop.f32.mrf.mxu0  ;;  %v111_v2 = vpop.f32.mrf.mxu1 }
  0xa2   :  { %371 = vmatmul.bf16.vlgmr.msrb.gmra.mxu0 %v163_v62  ;;  %384 = vmatmul.bf16.vlgmr.msrb.gmra.mxu1 %v164_v63 }
  0xa3   :  { %397 = vmatmul.bf16.vlgmr.msrb.gmra.mxu2 %v163_v62  ;;  %410 = vmatmul.bf16.vlgmr.msrb.gmra.mxu3 %v164_v63 }
 0x11f   :  { %v372_v5 = vpop.f32.mrf.mxu0  ;;  %v385_v6 = vpop.f32.mrf.mxu1 }
 0x120   :  { %v373_v7 = vadd.f32 %v372_v5, %v199_v4 }
 0x122   :  { %v386_v9 = vadd.f32 %v385_v6, %v373_v7 }
 0x124   :  { %v415_v16 = vmax.f32 %v386_v9, 0.0 }
 0x126   :  { %v398_v10 = vpop.f32.mrf.mxu2  ;;  %v411_v11 = vpop.f32.mrf.mxu3  ;;  %v423_v21 = vmul.f32 %v419_v18, %v415_v16 }
 0x127   :  { %v399_v13 = vadd.f32 %v398_v10, %v200_v8  ;;  %v374_v14 = vpop.f32.mrf.mxu0  ;;  %v387_v15 = vpop.f32.mrf.mxu1 }
 0x129   :  { %v412_v17 = vadd.f32 %v411_v11, %v399_v13 }
 0x12b   :  { %v416_v20 = vmax.f32 %v412_v17, 0.0 }
 0x12d   :  { %v424_v22 = vmul.f32 %v420_v19, %v416_v20 }
 0x12e   :  { %v400_v23 = vpop.f32.mrf.mxu2  ;;  %v413_v24 = vpop.f32.mrf.mxu3 }
 0x12f   :  { %v425_v25 = vadd.f32 %v424_v22, %v423_v21 }
 0x131   :  { %426 = vadd.xlane.f32.xlu0 %v425_v25 }
 0x1a4   :  { %v427_v27 = vpop.xlane.xlu0 %426 }
 0x1a5   :  { %v432_v28 = vadd.f32 %v619_v26, %v427_v27 }
 0x1a7   :  { %434 = vst.msk [vmem:[%s771_s9] sm:$0xff] %vm433_vm3, %v432_v28 }
 0x1a8   :  { %439 = vsyncpa [#allocation4], 1 }
 0x1a9   :  { %440 = vsyncpa [#allocation6], 1 }

</bundles_post_ra>
